<compile_context>
chip_gen: v5e
topology: v5e:2x2
jax: 0.10.0
libtpu: 0.0.40
codegen_flags: <defaults>
</compile_context>

<pallas_src>
import math

import jax
import jax.numpy as jnp
from jax.experimental import pallas as pl
from jax.experimental.pallas import tpu as pltpu


def make_positional_encoding(d_model: int, max_len: int = 5000,
                             dtype=jnp.float32) -> jnp.ndarray:
    """Deterministic sinusoidal table, identical to the PyTorch __init__.

    Built once in f32 then cast to `dtype` (the activation dtype) so the
    forward pass never has to slice/cast/materialize the table again.
    """
    assert d_model % 2 == 0, "sinusoidal table requires an even d_model"
    position = jnp.arange(0, max_len, dtype=jnp.float32)[:, None]           # (max_len, 1)
    div_term = jnp.exp(
        jnp.arange(0, d_model, 2, dtype=jnp.float32) * -(math.log(10000.0) / d_model)
    )                                                                        # (d_model/2,)
    angles = position * div_term                                             # (max_len, d_model/2)
    pe = jnp.zeros((max_len, d_model), dtype=jnp.float32)
    pe = pe.at[:, 0::2].set(jnp.sin(angles))
    pe = pe.at[:, 1::2].set(jnp.cos(angles))
    return pe.astype(dtype)                                                  # (max_len, d_model)


def _pe_add_kernel(x_ref, pe_ref, o_ref):
    # x_ref/o_ref: (B, ts, D) tile; pe_ref: (ts, D) tile broadcast over batch.
    # Pure VPU elementwise add; broadcast along the leading (non-lane) dim is free.
    o_ref[...] = (x_ref[...] + pe_ref[...][None]).astype(o_ref.dtype)


def _vmem_budget():
    """(target x-tile bytes, scoped vmem_limit_bytes), gated on the chip's VMEM."""
    try:
        vmem = pltpu.get_tpu_info().vmem_capacity_bytes
    except Exception:  # pragma: no cover - conservative fallback
        vmem = 64 * 1024 * 1024
    if vmem <= 64 * 1024 * 1024:
        # v7x: 64 MiB per TC — keep 3 streams x 2 buffers well under the limit.
        return 4 * 1024 * 1024, 48 * 1024 * 1024
    # v5e / v6e: 128 MiB physical, default scoped limit is only 16/32 MiB — raise it.
    return 8 * 1024 * 1024, 96 * 1024 * 1024


def _choose_tile_s(S: int, B: int, D: int, itemsize: int, target_bytes: int) -> int:
    """Sequence tile: ~target_bytes per (B, ts, D) x-block, dtype-aware row granularity."""
    if itemsize >= 4:
        gran = 8
    elif itemsize == 2:
        gran = 16          # bf16 packs two rows per sublane
    else:
        gran = 32
    ts = max(gran, target_bytes // max(1, B * D * itemsize))
    ts = (ts // gran) * gran
    if ts >= S:
        # Whole sequence fits in one tile. If S is big enough, split into >=2
        # tiles so the single "parallel" grid axis can span both TCs on v7x.
        if S >= 2 * gran:
            half = -(-S // 2)                     # ceil(S / 2)
            ts = min(S, -(-half // gran) * gran)  # round up to granularity
        else:
            ts = S                                # full extent — always legal
    return ts


def positional_encoding_forward(x: jnp.ndarray, pe: jnp.ndarray,
                                tile_s: int | None = None) -> jnp.ndarray:
    """x: (B, S, D). pe: (max_len, D) table (ideally already in x.dtype).

    Returns x + pe[None, :S, :] in x.dtype. The full table is passed unsliced;
    the BlockSpec index_map restricts DMA to the first ceil(S/ts) blocks.
    """
    B, S, D = x.shape
    max_len, d_pe = pe.shape
    assert S <= max_len, f"sequence length {S} exceeds positional table max_len {max_len}"
    assert d_pe == D, "pe d_model mismatch"
    # Note: for best perf build pe with dtype=x.dtype (otherwise the add promotes
    # in-kernel and pe DMA bytes double for bf16 activations).
    # Note: D not a multiple of 128 still works but lowers to masked partial stores.

    target_bytes, vmem_limit = _vmem_budget()
    ts = tile_s if tile_s is not None else _choose_tile_s(S, B, D, x.dtype.itemsize, target_bytes)
    grid = (pl.cdiv(S, ts),)

    return pl.pallas_call(
        _pe_add_kernel,
        out_shape=jax.ShapeDtypeStruct((B, S, D), x.dtype),
        grid_spec=pltpu.PrefetchScalarGridSpec(
            num_scalar_prefetch=0,
            grid=grid,
            in_specs=[
                pl.BlockSpec((B, ts, D), lambda s: (0, s, 0)),   # x tile (full batch)
                pl.BlockSpec((ts, D), lambda s: (s, 0)),         # pe tile (read once per s)
            ],
            out_specs=pl.BlockSpec((B, ts, D), lambda s: (0, s, 0)),
        ),
        compiler_params=pltpu.CompilerParams(
            # Single fully independent sequence-tile axis; parallel lets v7x's
            # two TensorCores split it (no-op on v5e/v6e).
            dimension_semantics=("parallel",),
            vmem_limit_bytes=vmem_limit,
        ),
        # No input_output_aliases: without jax.jit donation of x it only forces
        # a defensive copy. Re-add {0: 0} if the caller donates x.
    )(x, pe)


if __name__ == "__main__":
    key = jax.random.PRNGKey(0)
    D = 512          # d_model from the spec
    MAX_LEN = 128    # small table for the demo (spec default is 5000)

    # --- Check 1: small spec-consistent shapes, f32, single tile ---
    B, S = 2, 8
    pe = make_positional_encoding(D, max_len=MAX_LEN, dtype=jnp.float32)
    x = jax.random.normal(key, (B, S, D), dtype=jnp.float32)
    out = jax.block_until_ready(positional_encoding_forward(x, pe))
    ref = x + pe[None, :S, :]
    assert out.shape == (B, S, D)
    assert jnp.allclose(out, ref, atol=1e-6, rtol=1e-6), "f32 mismatch vs reference"

    # --- Check 2: forced small tile to exercise the tiled sequence grid ---
    S2 = 64
    x2 = jax.random.normal(jax.random.fold_in(key, 1), (B, S2, D), dtype=jnp.float32)
    out2 = jax.block_until_ready(positional_encoding_forward(x2, pe, tile_s=16))
    ref2 = x2 + pe[None, :S2, :]
    assert jnp.allclose(out2, ref2, atol=1e-6, rtol=1e-6), "tiled f32 mismatch vs reference"

    # --- Check 3: bf16 activations with a bf16 table (built once, no per-call cast) ---
    pe_bf = make_positional_encoding(D, max_len=MAX_LEN, dtype=jnp.bfloat16)
    x3 = x2.astype(jnp.bfloat16)
    out3 = jax.block_until_ready(positional_encoding_forward(x3, pe_bf))
    ref3 = x3 + pe_bf[None, :S2, :]
    assert out3.dtype == jnp.bfloat16
    assert jnp.allclose(out3.astype(jnp.float32), ref3.astype(jnp.float32),
                        atol=1e-2, rtol=1e-2), "bf16 mismatch vs reference"

    print("KERNEL_OK")
</pallas_src>

<mosaic_0001>
module attributes {stable_mosaic.version = 11 : i64} {
  func.func @_pe_add_kernel(%arg0: i32, %arg1: memref<2x8x512xf32, #tpu.memory_space<vmem>>, %arg2: memref<8x512xf32, #tpu.memory_space<vmem>>, %arg3: memref<2x8x512xf32, #tpu.memory_space<vmem>>) attributes {dimension_semantics = [#tpu.dimension_semantics<parallel>], iteration_bounds = array<i64: 1>, scalar_prefetch = 0 : i64, scratch_operands = 0 : i64, tpu.core_type = #tpu.core_type<tc>, window_params = [{transform_indices = @transform_0, window_bounds = array<i64: 2, 8, 512>}, {transform_indices = @transform_1, window_bounds = array<i64: 8, 512>}, {transform_indices = @transform_2, window_bounds = array<i64: 2, 8, 512>}]} {
    %c0 = arith.constant 0 : index
    %c0_0 = arith.constant 0 : index
    %c0_1 = arith.constant 0 : index
    %0 = vector.load %arg1[%c0, %c0_0, %c0_1] : memref<2x8x512xf32, #tpu.memory_space<vmem>>, vector<2x8x512xf32>
    %c0_2 = arith.constant 0 : index
    %c0_3 = arith.constant 0 : index
    %1 = vector.load %arg2[%c0_2, %c0_3] : memref<8x512xf32, #tpu.memory_space<vmem>>, vector<8x512xf32>
    %2 = vector.shape_cast %1 : vector<8x512xf32> to vector<1x8x512xf32>
    %3 = vector.broadcast %2 : vector<1x8x512xf32> to vector<2x8x512xf32>
    %4 = arith.addf %0, %3 : vector<2x8x512xf32>
    %c0_4 = arith.constant 0 : index
    %c0_5 = arith.constant 0 : index
    %c0_6 = arith.constant 0 : index
    %5 = vector.load %arg3[%c0_4, %c0_5, %c0_6] : memref<2x8x512xf32, #tpu.memory_space<vmem>>, vector<2x8x512xf32>
    tpu.vector_store %arg3[%c0_4, %c0_5, %c0_6], %4 {strides = array<i32>} : memref<2x8x512xf32, #tpu.memory_space<vmem>>, vector<2x8x512xf32>,
    return
  }
  func.func @transform_0(%arg0: i32) -> (i32, i32, i32) {
    %c0_i32 = arith.constant 0 : i32
    %c0_i32_0 = arith.constant 0 : i32
    %c0_i32_1 = arith.constant 0 : i32
    return %c0_i32, %arg0, %c0_i32_0 : i32, i32, i32
  }
  func.func @transform_1(%arg0: i32) -> (i32, i32) {
    %c0_i32 = arith.constant 0 : i32
    %c0_i32_0 = arith.constant 0 : i32
    return %arg0, %c0_i32 : i32, i32
  }
  func.func @transform_2(%arg0: i32) -> (i32, i32, i32) {
    %c0_i32 = arith.constant 0 : i32
    %c0_i32_0 = arith.constant 0 : i32
    %c0_i32_1 = arith.constant 0 : i32
    return %c0_i32, %arg0, %c0_i32_0 : i32, i32, i32
  }
}

</mosaic_0001>

<bundles_post_ra>
// kernel: tpu_custom_call.1
= control target key start
LH: loop header
LB: loop body
LE: loop exit
PB: predicated region body
PF: predicated region fallthrough
CT: control target
= control target key end

     0   :  { %7 = vsyncpa [#allocation3], 0  ;;  %s208_s0 = inlined_call_operand.hbm [shape: f32[2,8,512], index: 0, kind: input, shape index: {}]   ;;  %s209_s1 = inlined_call_operand.hbm [shape: f32[128,512], index: 1, kind: input, shape index: {}]   ;;  %s210_s2 = inlined_call_operand.hbm [shape: f32[2,8,512], index: 2, kind: output, shape index: {}]  }
   0x1   :  { %8 = vsyncpa [#allocation6], 0 }
   0x2   :  { %9 = vsyncpa [#allocation4], 0  ;;  %s14_s11 = sshll.u32 %s208_s0, 4  ;;  %s173_s12 = smov [#allocation2]   ;;  %s15_s11 = int_to_ptr.hbm [resolvable:$true] %s14_s11 }
   0x3   :  { %s16_s13 = sshll.u32 %s173_s12, 4  ;;  %s28_s16 = sshll.u32 %s209_s1, 4  ;;  %s17_s13 = int_to_ptr.vmem [resolvable:$true] %s16_s13  ;;  %s29_s16 = int_to_ptr.hbm [resolvable:$true] %s28_s16 }
   0x4   :  { %s174_s17 = smov 512   ;;  %s175_s18 = smov 32  }
   0x5   :  { %22 = dma.hbm_to_vmem [thread:$0]  %s15_s11, 1024, %s17_s13, [#allocation3], %s174_s17, %s174_s17, %s175_s18  }
   0x6   :  { %s176_s19 = smov [#allocation5]  }
   0x7   :  { %s30_s20 = sshll.u32 %s176_s19, 4  ;;  %s31_s20 = int_to_ptr.vmem [resolvable:$true] %s30_s20 }
   0x8   :  { %33 = dma.hbm_to_vmem [thread:$0]  %s29_s16, 512, %s31_s20, [#allocation6]  }
   0x9   :  { %167 = dma.done.wait [#allocation3], 1024  }
   0xa   :  { %168 = vsyncadd [#allocation3], 4294966272 }
   0xb   :  { %169 = dma.done.wait [#allocation6], 512  }
   0xc   :  { %170 = vsyncadd [#allocation6], 4294966784  ;;  %v42_v0 = vld [vmem:[#allocation2] sm:$0xff]  ;;  %v43_v2 = vld [vmem:[#allocation2 + $0x8] sm:$0xff]  ;;  %s177_s0 = smov [#allocation7]   ;;  %s76_s23 = sshll.u32 %s210_s2, 4  ;;  %s77_s23 = int_to_ptr.hbm [resolvable:$true] %s76_s23 }
   0xd   :  { %v50_v1 = vld [vmem:[#allocation5] sm:$0xff]  ;;  %v51_v4 = vld [vmem:[#allocation5 + $0x8] sm:$0xff]  ;;  %v44_v5 = vld [vmem:[#allocation2 + $0x10] sm:$0xff]  ;;  %s74_s1 = sshll.u32 %s177_s0, 4  ;;  %s75_s1 = int_to_ptr.vmem [resolvable:$true] %s74_s1 }
   0xe   :  { %v54_v3 = vadd.f32 %v50_v1, %v42_v0  ;;  %v52_v6 = vld [vmem:[#allocation5 + $0x10] sm:$0xff]  ;;  %v55_v7 = vadd.f32 %v51_v4, %v43_v2  ;;  %v45_v9 = vld [vmem:[#allocation2 + $0x18] sm:$0xff]  ;;  %v46_v11 = vld [vmem:[#allocation2 + $0x20] sm:$0xff] }
   0xf   :  { %v56_v8 = vadd.f32 %v52_v6, %v44_v5  ;;  %v53_v10 = vld [vmem:[#allocation5 + $0x18] sm:$0xff]  ;;  %v58_v13 = vadd.f32 %v50_v1, %v46_v11  ;;  %v47_v14 = vld [vmem:[#allocation2 + $0x28] sm:$0xff]  ;;  %v48_v15 = vld [vmem:[#allocation2 + $0x30] sm:$0xff] }
  0x10   :  { %62 = vst [vmem:[#allocation7] sm:$0xff] %v54_v3  ;;  %v57_v12 = vadd.f32 %v53_v10, %v45_v9  ;;  %v49_v16 = vld [vmem:[#allocation2 + $0x38] sm:$0xff]  ;;  %v59_v17 = vadd.f32 %v51_v4, %v47_v14  ;;  %v60_v18 = vadd.f32 %v52_v6, %v48_v15 }
  0x11   :  { %63 = vst [vmem:[#allocation7 + $0x8] sm:$0xff] %v55_v7  ;;  %v61_v19 = vadd.f32 %v53_v10, %v49_v16 }
  0x12   :  { %64 = vst [vmem:[#allocation7 + $0x10] sm:$0xff] %v56_v8 }
  0x13   :  { %65 = vst [vmem:[#allocation7 + $0x18] sm:$0xff] %v57_v12 }
  0x14   :  { %66 = vst [vmem:[#allocation7 + $0x20] sm:$0xff] %v58_v13 }
  0x15   :  { %67 = vst [vmem:[#allocation7 + $0x28] sm:$0xff] %v59_v17 }
  0x16   :  { %68 = vst [vmem:[#allocation7 + $0x30] sm:$0xff] %v60_v18 }
  0x17   :  { %69 = vst [vmem:[#allocation7 + $0x38] sm:$0xff] %v61_v19 }
  0x18   :  { %82 = dma.vmem_to_hbm [thread:$0]  %s75_s1, 1024, %s77_s23, [#allocation4], %s174_s17, %s174_s17, %s175_s18  }
  0x19   :  { %171 = dma.done.wait [#allocation4], 1024  }
  0x1a   :  { %172 = vsyncadd [#allocation4], 4294966272 }
  0x1b   :  { %87 = vsyncpa [#allocation3], 1 }
  0x1c   :  { %88 = vsyncpa [#allocation6], 1 }
  0x1d   :  { %89 = vsyncpa [#allocation4], 1 }

</bundles_post_ra>
